<compile_context>
chip_gen: v6e
topology: v6e:2x2x1
jax: 0.10.0
libtpu: 0.0.40
codegen_flags: <defaults>
</compile_context>

<pallas_src>
import functools

import jax
import jax.numpy as jnp
from jax.experimental import pallas as pl
from jax.experimental.pallas import tpu as pltpu

HIDDEN = 64
LANES = 128


def _dqn_kernel(x_ref, w1_ref, w2_ref, w3_ref, b_ref, o_ref):
    # x_ref:  (tb, obs_dim)  bf16
    # w1_ref: (obs_dim, 64)  bf16      w2_ref: (64, 64) bf16
    # w3_ref: (64, NOUT)     bf16      b_ref:  (3, NOUT) f32 (rows = b1,b2,b3)
    # o_ref:  (tb, NOUT)     f32
    x = x_ref[...]
    b_all = b_ref[...]                       # load once; biases broadcast below
    b1 = b_all[0:1, :HIDDEN]
    b2 = b_all[1:2, :HIDDEN]
    b3 = b_all[2:3, :]

    # bf16 matmuls with f32 accumulation; bias/ReLU epilogue stays f32.
    h1 = jnp.dot(x, w1_ref[...], preferred_element_type=jnp.float32) + b1
    h1 = jnp.maximum(h1, 0.0).astype(jnp.bfloat16)
    h2 = jnp.dot(h1, w2_ref[...], preferred_element_type=jnp.float32) + b2
    h2 = jnp.maximum(h2, 0.0).astype(jnp.bfloat16)
    out = jnp.dot(h2, w3_ref[...], preferred_element_type=jnp.float32) + b3
    o_ref[...] = out.astype(o_ref.dtype)     # full 128-lane (unmasked) stores


@functools.partial(jax.jit, static_argnames=("block_b",))
def dqn_forward(x, params, *, block_b=512):
    """Fused forward pass of DeepQNetwork.

    x: (B, obs_dim) float32
    params: dict with w1 (obs_dim,64), b1 (1,64), w2 (64,64), b2 (1,64),
            w3 (64,n_actions), b3 (1,n_actions)  -- all float32.
    Returns (B, n_actions) float32.
    """
    B, obs_dim = x.shape
    n_actions = params["w3"].shape[1]
    nout = ((n_actions + LANES - 1) // LANES) * LANES   # lane-dense output width

    # Batch tile: large to amortize per-step overhead, but keep >=2 grid steps
    # when B is big so v7x can shard the parallel batch axis over its 2 TCs.
    tb = min(block_b, B)
    if B >= 256 and pl.cdiv(B, tb) < 2:
        tb = (((B + 1) // 2 + 15) // 16) * 16           # ceil(B/2), 16-aligned
    grid = (pl.cdiv(B, tb),)

    # Cast matmul operands to bf16; pad layer-3 to the lane-dense width.
    xb = x.astype(jnp.bfloat16)
    w1 = params["w1"].astype(jnp.bfloat16)
    w2 = params["w2"].astype(jnp.bfloat16)
    w3 = jnp.pad(params["w3"], ((0, 0), (0, nout - n_actions))).astype(jnp.bfloat16)

    # Biases stay f32; pad to NOUT lanes and pack into one (3, NOUT) array.
    b1 = jnp.pad(params["b1"], ((0, 0), (0, nout - HIDDEN)))
    b2 = jnp.pad(params["b2"], ((0, 0), (0, nout - HIDDEN)))
    b3 = jnp.pad(params["b3"], ((0, 0), (0, nout - n_actions)))
    b_all = jnp.concatenate([b1, b2, b3], axis=0)       # (3, nout) f32

    # Whole-array specs for the (small) weights/biases: constant block index,
    # so Pallas skips re-DMA across grid steps.
    full = lambda a: pl.BlockSpec(a.shape, lambda i: (0,) * a.ndim)

    out = pl.pallas_call(
        _dqn_kernel,
        out_shape=jax.ShapeDtypeStruct((B, nout), jnp.float32),
        grid_spec=pltpu.PrefetchScalarGridSpec(
            num_scalar_prefetch=0,
            grid=grid,
            in_specs=[
                pl.BlockSpec((tb, obs_dim), lambda i: (i, 0)),  # x batch tile
                full(w1),
                full(w2),
                full(w3),
                full(b_all),
            ],
            out_specs=pl.BlockSpec((tb, nout), lambda i: (i, 0)),
        ),
        compiler_params=pltpu.CompilerParams(
            dimension_semantics=("parallel",),
        ),
    )(xb, w1, w2, w3, b_all)

    return out[:, :n_actions]


def init_params(key, obs_dim, n_actions):
    """Deterministic synthetic init (Kaiming-uniform-ish like torch.nn.Linear)."""
    ks = jax.random.split(key, 6)

    def linear(kw, kb, fan_in, fan_out):
        bound = 1.0 / jnp.sqrt(fan_in)
        w = jax.random.uniform(kw, (fan_in, fan_out), jnp.float32, -bound, bound)
        b = jax.random.uniform(kb, (1, fan_out), jnp.float32, -bound, bound)
        return w, b

    w1, b1 = linear(ks[0], ks[1], obs_dim, HIDDEN)
    w2, b2 = linear(ks[2], ks[3], HIDDEN, HIDDEN)
    w3, b3 = linear(ks[4], ks[5], HIDDEN, n_actions)
    return dict(w1=w1, b1=b1, w2=w2, b2=b2, w3=w3, b3=b3)


def dqn_reference(x, p):
    """Reference with the same bf16-matmul / f32-accumulate recipe as the kernel."""
    bf = jnp.bfloat16
    h1 = jnp.dot(x.astype(bf), p["w1"].astype(bf),
                 preferred_element_type=jnp.float32) + p["b1"]
    h1 = jnp.maximum(h1, 0.0)
    h2 = jnp.dot(h1.astype(bf), p["w2"].astype(bf),
                 preferred_element_type=jnp.float32) + p["b2"]
    h2 = jnp.maximum(h2, 0.0)
    return jnp.dot(h2.astype(bf), p["w3"].astype(bf),
                   preferred_element_type=jnp.float32) + p["b3"]


if __name__ == "__main__":
    obs_dim, n_actions, batch = 16, 4, 64
    key = jax.random.PRNGKey(0)
    kx, kp = jax.random.split(key)

    x = jax.random.normal(kx, (batch, obs_dim), jnp.float32)
    params = init_params(kp, obs_dim, n_actions)

    out = dqn_forward(x, params)
    out = jax.block_until_ready(out)

    ref = dqn_reference(x, params)
    assert out.shape == (batch, n_actions), out.shape
    assert jnp.allclose(out, ref, atol=1e-2, rtol=1e-2), "mismatch vs reference"

    print("KERNEL_OK")
</pallas_src>

<mosaic_0001>
module attributes {stable_mosaic.version = 11 : i64} {
  func.func @_dqn_kernel(%arg0: i32, %arg1: memref<64x16xbf16, #tpu.memory_space<vmem>>, %arg2: memref<16x64xbf16, #tpu.memory_space<vmem>>, %arg3: memref<64x64xbf16, #tpu.memory_space<vmem>>, %arg4: memref<64x128xbf16, #tpu.memory_space<vmem>>, %arg5: memref<3x128xf32, #tpu.memory_space<vmem>>, %arg6: memref<64x128xf32, #tpu.memory_space<vmem>>) attributes {dimension_semantics = [#tpu.dimension_semantics<parallel>], iteration_bounds = array<i64: 1>, scalar_prefetch = 0 : i64, scratch_operands = 0 : i64, tpu.core_type = #tpu.core_type<tc>, window_params = [{transform_indices = @transform_0, window_bounds = array<i64: 64, 16>}, {pipeline_mode = #tpu.pipeline_mode<synchronous>, transform_indices = @transform_1, window_bounds = array<i64: 16, 64>}, {pipeline_mode = #tpu.pipeline_mode<synchronous>, transform_indices = @transform_2, window_bounds = array<i64: 64, 64>}, {pipeline_mode = #tpu.pipeline_mode<synchronous>, transform_indices = @transform_3, window_bounds = array<i64: 64, 128>}, {pipeline_mode = #tpu.pipeline_mode<synchronous>, transform_indices = @transform_4, window_bounds = array<i64: 3, 128>}, {transform_indices = @transform_5, window_bounds = array<i64: 64, 128>}]} {
    %c0 = arith.constant 0 : index
    %c0_0 = arith.constant 0 : index
    %0 = vector.load %arg1[%c0, %c0_0] : memref<64x16xbf16, #tpu.memory_space<vmem>>, vector<64x16xbf16>
    %c0_1 = arith.constant 0 : index
    %c0_2 = arith.constant 0 : index
    %1 = vector.load %arg5[%c0_1, %c0_2] : memref<3x128xf32, #tpu.memory_space<vmem>>, vector<3x128xf32>
    %2 = vector.extract_strided_slice %1 {offsets = [0, 0], sizes = [1, 64], strides = [1, 1]} : vector<3x128xf32> to vector<1x64xf32>
    %3 = vector.extract_strided_slice %1 {offsets = [1, 0], sizes = [1, 64], strides = [1, 1]} : vector<3x128xf32> to vector<1x64xf32>
    %4 = vector.extract_strided_slice %1 {offsets = [2, 0], sizes = [1, 128], strides = [1, 1]} : vector<3x128xf32> to vector<1x128xf32>
    %c0_3 = arith.constant 0 : index
    %c0_4 = arith.constant 0 : index
    %5 = vector.load %arg2[%c0_3, %c0_4] : memref<16x64xbf16, #tpu.memory_space<vmem>>, vector<16x64xbf16>
    %cst = arith.constant dense<0.000000e+00> : vector<64x64xf32>
    %6 = tpu.matmul %0, %5, %cst {dimension_numbers = #tpu.dot_dimension_numbers<[1], [0], [0], [1], [0, 0, 1, 1], [], []>} : vector<64x16xbf16>, vector<16x64xbf16>, vector<64x64xf32> -> vector<64x64xf32>
    %7 = vector.broadcast %2 : vector<1x64xf32> to vector<64x64xf32>
    %8 = arith.addf %6, %7 : vector<64x64xf32>
    %cst_5 = arith.constant 0.000000e+00 : f32
    %9 = vector.broadcast %cst_5 : f32 to vector<64x64xf32>
    %10 = arith.maximumf %8, %9 : vector<64x64xf32>
    %11 = arith.truncf %10 : vector<64x64xf32> to vector<64x64xbf16>
    %c0_6 = arith.constant 0 : index
    %c0_7 = arith.constant 0 : index
    %12 = vector.load %arg3[%c0_6, %c0_7] : memref<64x64xbf16, #tpu.memory_space<vmem>>, vector<64x64xbf16>
    %cst_8 = arith.constant dense<0.000000e+00> : vector<64x64xf32>
    %13 = tpu.matmul %11, %12, %cst_8 {dimension_numbers = #tpu.dot_dimension_numbers<[1], [0], [0], [1], [0, 0, 1, 1], [], []>} : vector<64x64xbf16>, vector<64x64xbf16>, vector<64x64xf32> -> vector<64x64xf32>
    %14 = vector.broadcast %3 : vector<1x64xf32> to vector<64x64xf32>
    %15 = arith.addf %13, %14 : vector<64x64xf32>
    %cst_9 = arith.constant 0.000000e+00 : f32
    %16 = vector.broadcast %cst_9 : f32 to vector<64x64xf32>
    %17 = arith.maximumf %15, %16 : vector<64x64xf32>
    %18 = arith.truncf %17 : vector<64x64xf32> to vector<64x64xbf16>
    %c0_10 = arith.constant 0 : index
    %c0_11 = arith.constant 0 : index
    %19 = vector.load %arg4[%c0_10, %c0_11] : memref<64x128xbf16, #tpu.memory_space<vmem>>, vector<64x128xbf16>
    %cst_12 = arith.constant dense<0.000000e+00> : vector<64x128xf32>
    %20 = tpu.matmul %18, %19, %cst_12 {dimension_numbers = #tpu.dot_dimension_numbers<[1], [0], [0], [1], [0, 0, 1, 1], [], []>} : vector<64x64xbf16>, vector<64x128xbf16>, vector<64x128xf32> -> vector<64x128xf32>
    %21 = vector.broadcast %4 : vector<1x128xf32> to vector<64x128xf32>
    %22 = arith.addf %20, %21 : vector<64x128xf32>
    %c0_13 = arith.constant 0 : index
    %c0_14 = arith.constant 0 : index
    %23 = vector.load %arg6[%c0_13, %c0_14] : memref<64x128xf32, #tpu.memory_space<vmem>>, vector<64x128xf32>
    tpu.vector_store %arg6[%c0_13, %c0_14], %22 {strides = array<i32>} : memref<64x128xf32, #tpu.memory_space<vmem>>, vector<64x128xf32>,
    return
  }
  func.func @transform_0(%arg0: i32) -> (i32, i32) {
    %c0_i32 = arith.constant 0 : i32
    %c0_i32_0 = arith.constant 0 : i32
    return %arg0, %c0_i32 : i32, i32
  }
  func.func @transform_1(%arg0: i32) -> (i32, i32) {
    %c0_i32 = arith.constant 0 : i32
    %c0_i32_0 = arith.constant 0 : i32
    %c0_i32_1 = arith.constant 0 : i32
    return %c0_i32, %c0_i32_0 : i32, i32
  }
  func.func @transform_2(%arg0: i32) -> (i32, i32) {
    %c0_i32 = arith.constant 0 : i32
    %c0_i32_0 = arith.constant 0 : i32
    %c0_i32_1 = arith.constant 0 : i32
    return %c0_i32, %c0_i32_0 : i32, i32
  }
  func.func @transform_3(%arg0: i32) -> (i32, i32) {
    %c0_i32 = arith.constant 0 : i32
    %c0_i32_0 = arith.constant 0 : i32
    %c0_i32_1 = arith.constant 0 : i32
    return %c0_i32, %c0_i32_0 : i32, i32
  }
  func.func @transform_4(%arg0: i32) -> (i32, i32) {
    %c0_i32 = arith.constant 0 : i32
    %c0_i32_0 = arith.constant 0 : i32
    %c0_i32_1 = arith.constant 0 : i32
    return %c0_i32, %c0_i32_0 : i32, i32
  }
  func.func @transform_5(%arg0: i32) -> (i32, i32) {
    %c0_i32 = arith.constant 0 : i32
    %c0_i32_0 = arith.constant 0 : i32
    return %arg0, %c0_i32 : i32, i32
  }
}

</mosaic_0001>

<bundles_post_ra>
// kernel: dqn_forward.1
= control target key start
LH: loop header
LB: loop body
LE: loop exit
PB: predicated region body
PF: predicated region fallthrough
CT: control target
= control target key end

     0   :  { %vm62_vm0 = vcmask 130048   ;;  %v32_v10 = vlaneseq  ;;  %vm188_vm1 = vcmask 523264   ;;  %s618_s1 = inlined_call_operand.vmem [shape: bf16[16,64], index: 1, kind: input, shape index: {}]   ;;  %s619_s0 = inlined_call_operand.vmem [shape: bf16[64,16], index: 0, kind: input, shape index: {}]   ;;  %s620_s2 = inlined_call_operand.vmem [shape: bf16[64,64], index: 2, kind: input, shape index: {}]   ;;  %s621_s3 = inlined_call_operand.vmem [shape: bf16[64,128], index: 3, kind: input, shape index: {}]   ;;  %s622_s4 = inlined_call_operand.vmem [shape: f32[3,128], index: 4, kind: input, shape index: {}]   ;;  %s623_s5 = inlined_call_operand.vmem [shape: f32[64,128], index: 5, kind: output, shape index: {}]  }
   0x1   :  { %v491_v0 = vld [vmem:[%s618_s1] sm:$0xff]   ;;  %v493_v2 = vld [vmem:[%s619_s0 + $0x8] sm:$0xff]   ;;  %v494_v3 = vld [vmem:[%s619_s0 + $0x10] sm:$0xff]  }
   0x2   :  { %v492_v1 = vld [vmem:[%s619_s0] sm:$0xff]   ;;  %449 = vmatprep.subr.bf16.mxu0 %v491_v0  ;;  %v496_v4 = vld [vmem:[%s620_s2 + $0x18] sm:$0xff]   ;;  %v497_v6 = vld [vmem:[%s620_s2 + $0x10] sm:$0xff]   ;;  %v564_v11 = vshrl.u32 %v32_v10, 7 }
   0x3   :  { %450 = vmatpush3.bf16.msra.mxu0 %v491_v0  ;;  %451 = vmatprep.mubr.msk.bf16.mxu0 %vm62_vm0, %v492_v1  ;;  %v495_v5 = vld [vmem:[%s619_s0 + $0x18] sm:$0xff]   ;;  %v498_v7 = vld [vmem:[%s620_s2 + $0x8] sm:$0xff]   ;;  %v499_v8 = vld [vmem:[%s620_s2] sm:$0xff]  }
   0x4   :  { %459 = vmatprep.subr.bf16.mxu1 %v496_v4  ;;  %v500_v9 = vld [vmem:[%s621_s3 + $0x18] sm:$0xff]   ;;  %v34_v12 = vsub.s32 0, %v564_v11  ;;  %v570_v13 = vld [vmem:[%s622_s4] sm:$0x7]  ;;  %v501_v43 = vld [vmem:[%s621_s3 + $0x10] sm:$0xff]   ;;  %v162_v46 = vsub.s32 1, %v564_v11 }
   0x5   :  { %460 = vmatpush3.bf16.msra.mxu1 %v496_v4  ;;  %475 = vmatprep.subr.bf16.mxu0 %v500_v9  ;;  %v502_v44 = vld [vmem:[%s621_s3 + $0x8] sm:$0xff]   ;;  %v503_v45 = vld [vmem:[%s621_s3] sm:$0xff]  }
   0x6   :  { %452 = vmatmul.mubr.msk.bf16.vlgmr.msra.gmra.mxu0 %vm62_vm0, %v493_v2  ;;  %461 = vmatprep.subr.bf16.mxu1 %v497_v6  ;;  %v35_v15 = vrot.slane %v570_v13, %v34_v12  ;;  %v163_v48 = vrot.slane %v570_v13, %v162_v46 }
   0x7   :  { %455 = vmatprep.mubr.msk.bf16.mxu0 %vm62_vm0, %v494_v3  ;;  %476 = vmatpush3.bf16.msra.mxu0 %v500_v9 }
   0x8   :  { %477 = vmatprep.subr.bf16.mxu0 %v501_v43 }
   0x9   :  { %462 = vmatpush3.bf16.msra.mxu1 %v497_v6 }
   0xa   :  { %463 = vmatprep.subr.bf16.mxu1 %v498_v7 }
   0xb   :  { %478 = vmatpush3.bf16.msra.mxu0 %v501_v43 }
   0xc   :  { %479 = vmatprep.subr.bf16.mxu0 %v502_v44 }
   0xd   :  { %464 = vmatpush3.bf16.msra.mxu1 %v498_v7 }
   0xe   :  { %456 = vmatmul.mubr.msk.bf16.gmra.mxu0 %vm62_vm0, %v495_v5  ;;  %465 = vmatprep.subr.bf16.mxu1 %v499_v8 }
   0xf   :  { %480 = vmatpush3.bf16.msra.mxu0 %v502_v44 }
  0x10   :  { %481 = vmatprep.subr.bf16.mxu0 %v503_v45 }
  0x11   :  { %466 = vmatpush3.bf16.msra.mxu1 %v499_v8 }
  0x13   :  { %482 = vmatpush3.bf16.msra.mxu0 %v503_v45 }
  0xc6   :  { %v453_v14 = vpop.f32.mrf.mxu0 }
  0xc7   :  { %v118_v20 = vadd.f32 %v453_v14, %v35_v15  ;;  %v288_v14 = vsub.s32 2, %v564_v11 }
  0xc8   :  { %v109_v16 = vpop.f32.mrf.mxu0 }
  0xc9   :  { %v110_v18 = vadd.f32 %v109_v16, %v35_v15  ;;  %v142_v27 = vmax.f32 %v118_v20, 0.0 }
  0xca   :  { %v454_v17 = vpop.f32.mrf.mxu0 }
  0xcb   :  { %v121_v19 = vadd.f32 %v454_v17, %v35_v15  ;;  %v140_v25 = vmax.f32 %v110_v18, 0.0 }
  0xcc   :  { %v112_v21 = vpop.f32.mrf.mxu0 }
  0xcd   :  { %v113_v22 = vadd.f32 %v112_v21, %v35_v15  ;;  %v143_v23 = vmax.f32 %v121_v19, 0.0 }
  0xce   :  { %v457_v24 = vpop.f32.mrf.mxu0 }
  0xcf   :  { %v141_v26 = vmax.f32 %v113_v22, 0.0  ;;  %v149_v30 = vpack.c.bf16 %v143_v23, %v142_v27  ;;  %v134_v34 = vadd.f32 %v457_v24, %v35_v15 }
  0xd0   :  { %v125_v28 = vpop.f32.mrf.mxu0 }
  0xd1   :  { %v148_v29 = vpack.c.bf16 %v141_v26, %v140_v25  ;;  %v126_v32 = vadd.f32 %v125_v28, %v35_v15  ;;  %v146_v40 = vmax.f32 %v134_v34, 0.0 }
  0xd2   :  { %v458_v31 = vpop.f32.mrf.mxu0 }
  0xd3   :  { %v137_v33 = vadd.f32 %v458_v31, %v35_v15  ;;  %467 = vmatprep.mubr.msk.bf16.mxu1 %vm188_vm1, %v148_v29  ;;  %v144_v38 = vmax.f32 %v126_v32, 0.0 }
  0xd4   :  { %v128_v35 = vpop.f32.mrf.mxu0  ;;  %468 = vmatmul.mubr.msk.bf16.vlgmr.msra.gmra.mxu1 %vm188_vm1, %v149_v30 }
  0xd5   :  { %v129_v36 = vadd.f32 %v128_v35, %v35_v15  ;;  %v147_v37 = vmax.f32 %v137_v33, 0.0  ;;  %v289_v15 = vrot.slane %v570_v13, %v288_v14 }
  0xd7   :  { %v145_v39 = vmax.f32 %v129_v36, 0.0  ;;  %v151_v42 = vpack.c.bf16 %v147_v37, %v146_v40 }
  0xd9   :  { %v150_v41 = vpack.c.bf16 %v145_v39, %v144_v38 }
  0xdb   :  { %471 = vmatprep.mubr.msk.bf16.mxu1 %vm188_vm1, %v150_v41 }
  0xdc   :  { %472 = vmatmul.mubr.msk.bf16.gmra.mxu1 %vm188_vm1, %v151_v42 }
 0x194   :  { %v469_v47 = vpop.f32.mrf.mxu1 }
 0x195   :  { %v244_v53 = vadd.f32 %v469_v47, %v163_v48 }
 0x196   :  { %v235_v49 = vpop.f32.mrf.mxu1 }
 0x197   :  { %v236_v51 = vadd.f32 %v235_v49, %v163_v48  ;;  %v268_v60 = vmax.f32 %v244_v53, 0.0 }
 0x198   :  { %v470_v50 = vpop.f32.mrf.mxu1 }
 0x199   :  { %v247_v52 = vadd.f32 %v470_v50, %v163_v48  ;;  %v266_v58 = vmax.f32 %v236_v51, 0.0 }
 0x19a   :  { %v238_v54 = vpop.f32.mrf.mxu1 }
 0x19b   :  { %v239_v55 = vadd.f32 %v238_v54, %v163_v48  ;;  %v269_v56 = vmax.f32 %v247_v52, 0.0 }
 0x19c   :  { %v473_v57 = vpop.f32.mrf.mxu1 }
 0x19d   :  { %v267_v59 = vmax.f32 %v239_v55, 0.0  ;;  %v275_v63 = vpack.c.bf16 %v269_v56, %v268_v60  ;;  %v260_v3 = vadd.f32 %v473_v57, %v163_v48 }
 0x19e   :  { %v251_v61 = vpop.f32.mrf.mxu1 }
 0x19f   :  { %v274_v62 = vpack.c.bf16 %v267_v59, %v266_v58  ;;  %v252_v1 = vadd.f32 %v251_v61, %v163_v48  ;;  %v272_v9 = vmax.f32 %v260_v3, 0.0 }
 0x1a0   :  { %v474_v0 = vpop.f32.mrf.mxu1 }
 0x1a1   :  { %v263_v2 = vadd.f32 %v474_v0, %v163_v48  ;;  %483 = vmatprep.mubr.msk.bf16.mxu0 %vm188_vm1, %v274_v62  ;;  %v270_v7 = vmax.f32 %v252_v1, 0.0 }
 0x1a2   :  { %v254_v4 = vpop.f32.mrf.mxu1  ;;  %484 = vmatmul.mubr.msk.bf16.vlgmr.msra.gmra.mxu0 %vm188_vm1, %v275_v63 }
 0x1a3   :  { %v255_v5 = vadd.f32 %v254_v4, %v163_v48  ;;  %v273_v6 = vmax.f32 %v263_v2, 0.0 }
 0x1a5   :  { %v271_v8 = vmax.f32 %v255_v5, 0.0  ;;  %v277_v12 = vpack.c.bf16 %v273_v6, %v272_v9 }
 0x1a7   :  { %v276_v10 = vpack.c.bf16 %v271_v8, %v270_v7 }
 0x1a9   :  { %487 = vmatprep.mubr.msk.bf16.mxu0 %vm188_vm1, %v276_v10 }
 0x1aa   :  { %488 = vmatmul.mubr.msk.bf16.gmra.mxu0 %vm188_vm1, %v277_v12 }
 0x262   :  { %v485_v16 = vpop.f32.mrf.mxu0 }
 0x263   :  { %v369_v17 = vadd.f32 %v485_v16, %v289_v15 }
 0x264   :  { %v360_v18 = vpop.f32.mrf.mxu0 }
 0x265   :  { %393 = vst [vmem:[%s623_s5 + $0x10] sm:$0xff] %v369_v17  ;;  %v361_v19 = vadd.f32 %v360_v18, %v289_v15 }
 0x266   :  { %v486_v20 = vpop.f32.mrf.mxu0 }
 0x267   :  { %391 = vst [vmem:[%s623_s5] sm:$0xff] %v361_v19  ;;  %v372_v21 = vadd.f32 %v486_v20, %v289_v15 }
 0x268   :  { %v363_v22 = vpop.f32.mrf.mxu0 }
 0x269   :  { %394 = vst [vmem:[%s623_s5 + $0x18] sm:$0xff] %v372_v21  ;;  %v364_v11 = vadd.f32 %v363_v22, %v289_v15 }
 0x26a   :  { %v489_v13 = vpop.f32.mrf.mxu0 }
 0x26b   :  { %392 = vst [vmem:[%s623_s5 + $0x8] sm:$0xff] %v364_v11  ;;  %v385_v23 = vadd.f32 %v489_v13, %v289_v15 }
 0x26c   :  { %v376_v24 = vpop.f32.mrf.mxu0 }
 0x26d   :  { %397 = vst [vmem:[%s623_s5 + $0x30] sm:$0xff] %v385_v23  ;;  %v377_v25 = vadd.f32 %v376_v24, %v289_v15 }
 0x26e   :  { %v490_v26 = vpop.f32.mrf.mxu0 }
 0x26f   :  { %395 = vst [vmem:[%s623_s5 + $0x20] sm:$0xff] %v377_v25  ;;  %v388_v27 = vadd.f32 %v490_v26, %v289_v15 }
 0x270   :  { %v379_v28 = vpop.f32.mrf.mxu0 }
 0x271   :  { %398 = vst [vmem:[%s623_s5 + $0x38] sm:$0xff] %v388_v27  ;;  %v380_v29 = vadd.f32 %v379_v28, %v289_v15 }
 0x273   :  { %396 = vst [vmem:[%s623_s5 + $0x28] sm:$0xff] %v380_v29 }

</bundles_post_ra>
